<compile_context>
chip_gen: v5e
topology: v5e:2x2
jax: 0.10.0
libtpu: 0.0.40
codegen_flags: <defaults>
</compile_context>

<pallas_src>
import math
from functools import partial

import jax
import jax.numpy as jnp
from jax.experimental import pallas as pl
from jax.experimental.pallas import tpu as pltpu


# ---------------------------------------------------------------------------
# Kernel: one invocation, whole problem resident in VMEM.
#   adj_ref : (R, N)           (A_k + I) blocks row-stacked, R = W * 2B * N,
#                              block order k = (window, modality, batch)
#   x_ref   : (R, Fin)         node features in the same row order
#   w_ref   : (W*Fin, W*Fout)  window-block-diagonal GCN weights
#   out_ref : (2B*N, W*Fout)   rows = (modality, batch, node), cols = (window, fout)
# ---------------------------------------------------------------------------
def generator_kernel(adj_ref, x_ref, w_ref, out_ref, *, num_windows,
                     groups_per_window, node_num, in_features):
    W, G, N, Fin = num_windows, groups_per_window, node_num, in_features

    out = jnp.zeros(out_ref.shape, jnp.float32)
    for w in range(W):
        # ---- Stage 1: per-(modality, batch) block GCN propagation ----------
        h_blocks = []
        for g in range(G):
            k = w * G + g
            a_k = adj_ref[k * N:(k + 1) * N, :]            # (N, N) = A_k + I
            x_k = x_ref[k * N:(k + 1) * N, :]              # (N, Fin)
            # D^-1/2 from the row degrees (lane reduce -> EUP rsqrt).
            d_k = jax.lax.rsqrt(jnp.sum(a_k, axis=-1, keepdims=True))  # (N, 1)
            # (D^-1/2 (A+I)) @ (D^-1/2 X)  ==  D^-1/2 (A+I) D^-1/2 X  (exact)
            h_blocks.append(
                jnp.dot(a_k * d_k, x_k * d_k,
                        preferred_element_type=jnp.float32))           # (N, Fin)
        # Sublane concat (vreg placement only, no lane shuffles).
        h_w = jnp.concatenate(h_blocks, axis=0)            # (G*N, Fin)

        # ---- Stage 2: accumulate H_w @ W[w] into the lane-dense output ----
        # w_ref row block w has weights[w] in its own column block and exact
        # zeros elsewhere, so summing over windows is exact.
        out = out + jnp.dot(h_w, w_ref[w * Fin:(w + 1) * Fin, :],
                            preferred_element_type=jnp.float32)        # (G*N, W*Fout)

    out_ref[...] = out


@jax.jit
def generator_forward(bike_in_shots, bike_adj, taxi_in_shots, taxi_adj, weights):
    B, W, N, Fin = bike_in_shots.shape
    Fout = weights.shape[-1]
    G = 2 * B                     # (modality, batch) groups per window
    K = W * G                     # number of independent (window, modality, batch) blocks
    R = K * N                     # total stacked rows
    f32 = jnp.float32

    # ---- wrapper-side layout plumbing (small XLA fusions) ----
    # Blocks ordered (window, modality, batch): k = (w*2 + m)*B + b.
    adj_blocks = jnp.stack([bike_adj, taxi_adj], axis=0)           # (2, B, W, N, N)
    adj_blocks = jnp.transpose(adj_blocks, (2, 0, 1, 3, 4))         # (W, 2, B, N, N)
    # Fold +I here (fuses with the assembly); keep blocks compact (no union matrix).
    adj_stacked = (adj_blocks.astype(f32) +
                   jnp.eye(N, dtype=f32)).reshape(R, N)             # (192, 16)

    x_blocks = jnp.stack([bike_in_shots, taxi_in_shots], axis=0)    # (2, B, W, N, F)
    x_blocks = jnp.transpose(x_blocks, (2, 0, 1, 3, 4))             # (W, 2, B, N, F)
    x_stacked = x_blocks.reshape(R, Fin).astype(f32)                # (192, 8)

    # Window-block-diagonal weights: (W*Fin, W*Fout); off-window blocks are exact 0.
    w_eye = jnp.eye(W, dtype=f32)
    w_blk = (weights.astype(f32)[:, :, None, :] *
             w_eye[:, None, :, None]).reshape(W * Fin, W * Fout)    # (24, 24)

    flops = 2 * K * N * N * Fin + 2 * W * (G * N) * Fin * (W * Fout)
    bytes_accessed = 4 * (R * N + R * Fin + (W * Fin) * (W * Fout) +
                          (G * N) * (W * Fout))

    out = pl.pallas_call(
        partial(generator_kernel, num_windows=W, groups_per_window=G,
                node_num=N, in_features=Fin),
        out_shape=jax.ShapeDtypeStruct((G * N, W * Fout), f32),
        in_specs=[pl.BlockSpec(memory_space=pltpu.MemorySpace.VMEM)] * 3,
        out_specs=pl.BlockSpec(memory_space=pltpu.MemorySpace.VMEM),
        cost_estimate=pl.CostEstimate(flops=flops, transcendentals=R,
                                      bytes_accessed=bytes_accessed),
    )(adj_stacked, x_stacked, w_blk)

    # (2B*N, W*Fout): rows index (m, b, n), cols index (w, o)
    #   -> (2, B, W, N, Fout) -> split into bike / taxi.
    out = out.reshape(2, B, N, W, Fout).transpose(0, 1, 3, 2, 4)
    return out[0], out[1]


def xavier_uniform_3d(key, shape):
    # Matches torch.nn.init.xavier_uniform_ fan computation for a 3-D tensor
    # (W, Fin, Fout): fan_in = Fin * Fout, fan_out = W * Fout.
    fan_in = shape[1] * shape[2]
    fan_out = shape[0] * shape[2]
    bound = math.sqrt(6.0 / (fan_in + fan_out))
    return jax.random.uniform(key, shape, jnp.float32, -bound, bound)


def reference_forward(bike_in_shots, bike_adj, taxi_in_shots, taxi_adj, weights):
    # Pure-JAX mirror of the PyTorch forward (including the explicit merged
    # block adjacency with zero cross blocks) for correctness checking.
    B, W, N, Fin = bike_in_shots.shape
    eye = jnp.eye(N, dtype=jnp.float32)[None, None]

    def norm(adj):
        a = adj + eye
        diag = (jnp.sum(a, axis=-1, keepdims=True) ** -0.5) * eye
        return diag @ a @ diag

    bike_hat = norm(bike_adj)
    taxi_hat = norm(taxi_adj)
    zeros = jnp.zeros_like(bike_hat)
    top = jnp.concatenate([bike_hat, zeros], axis=-1)
    bottom = jnp.concatenate([zeros, taxi_hat], axis=-1)
    adj = jnp.concatenate([top, bottom], axis=-2)
    in_shots = jnp.concatenate([bike_in_shots, taxi_in_shots], axis=-2)
    out = adj @ in_shots @ weights[None]
    return out[:, :, :N, :], out[:, :, N:, :]


if __name__ == "__main__":
    batch_size, window_size, node_num = 2, 3, 16
    in_features, out_features = 8, 8

    key = jax.random.PRNGKey(0)
    k1, k2, k3, k4, k5 = jax.random.split(key, 5)

    # Non-negative adjacencies so degrees are strictly positive (same
    # assumption as the PyTorch module's rowsum^-0.5).
    bike_adj = jax.random.uniform(k1, (batch_size, window_size, node_num, node_num),
                                  jnp.float32)
    taxi_adj = jax.random.uniform(k2, (batch_size, window_size, node_num, node_num),
                                  jnp.float32)
    bike_in_shots = jax.random.normal(k3, (batch_size, window_size, node_num, in_features),
                                      jnp.float32)
    taxi_in_shots = jax.random.normal(k4, (batch_size, window_size, node_num, in_features),
                                      jnp.float32)
    gcn1_weights = xavier_uniform_3d(k5, (window_size, in_features, out_features))

    bike_out, taxi_out = generator_forward(bike_in_shots, bike_adj,
                                           taxi_in_shots, taxi_adj, gcn1_weights)
    jax.block_until_ready((bike_out, taxi_out))

    ref_bike, ref_taxi = reference_forward(bike_in_shots, bike_adj,
                                           taxi_in_shots, taxi_adj, gcn1_weights)
    assert bike_out.shape == (batch_size, window_size, node_num, out_features)
    assert taxi_out.shape == (batch_size, window_size, node_num, out_features)
    assert jnp.allclose(bike_out, ref_bike, rtol=1e-4, atol=1e-5)
    assert jnp.allclose(taxi_out, ref_taxi, rtol=1e-4, atol=1e-5)

    print("KERNEL_OK")
</pallas_src>

<mosaic_0001>
module attributes {stable_mosaic.version = 11 : i64} {
  func.func @generator_kernel(%arg0: memref<192x16xf32, #tpu.memory_space<vmem>>, %arg1: memref<192x8xf32, #tpu.memory_space<vmem>>, %arg2: memref<24x24xf32, #tpu.memory_space<vmem>>, %arg3: memref<64x24xf32, #tpu.memory_space<vmem>>) attributes {dimension_semantics = [], scalar_prefetch = 0 : i64, scratch_operands = 0 : i64, tpu.core_type = #tpu.core_type<tc>} {
    %cst = arith.constant 0.000000e+00 : f32
    %0 = vector.broadcast %cst : f32 to vector<64x24xf32>
    %c0 = arith.constant 0 : index
    %c0_0 = arith.constant 0 : index
    %1 = vector.load %arg0[%c0, %c0_0] : memref<192x16xf32, #tpu.memory_space<vmem>>, vector<16x16xf32>
    %c0_1 = arith.constant 0 : index
    %c0_2 = arith.constant 0 : index
    %2 = vector.load %arg1[%c0_1, %c0_2] : memref<192x8xf32, #tpu.memory_space<vmem>>, vector<16x8xf32>
    %cst_3 = arith.constant dense<0.000000e+00> : vector<16xf32>
    %3 = vector.multi_reduction <add>, %1, %cst_3 [1] : vector<16x16xf32> to vector<16xf32>
    %4 = vector.shape_cast %3 : vector<16xf32> to vector<16x1xf32>
    %5 = math.rsqrt %4 : vector<16x1xf32>
    %6 = vector.broadcast %5 : vector<16x1xf32> to vector<16x16xf32>
    %7 = arith.mulf %1, %6 : vector<16x16xf32>
    %8 = vector.broadcast %5 : vector<16x1xf32> to vector<16x8xf32>
    %9 = arith.mulf %2, %8 : vector<16x8xf32>
    %cst_4 = arith.constant dense<0.000000e+00> : vector<16x8xf32>
    %10 = tpu.matmul %7, %9, %cst_4 {dimension_numbers = #tpu.dot_dimension_numbers<[1], [0], [0], [1], [0, 0, 1, 1], [], []>} : vector<16x16xf32>, vector<16x8xf32>, vector<16x8xf32> -> vector<16x8xf32>
    %c16 = arith.constant 16 : index
    %c0_5 = arith.constant 0 : index
    %11 = vector.load %arg0[%c16, %c0_5] : memref<192x16xf32, #tpu.memory_space<vmem>>, vector<16x16xf32>
    %c16_6 = arith.constant 16 : index
    %c0_7 = arith.constant 0 : index
    %12 = vector.load %arg1[%c16_6, %c0_7] : memref<192x8xf32, #tpu.memory_space<vmem>>, vector<16x8xf32>
    %cst_8 = arith.constant dense<0.000000e+00> : vector<16xf32>
    %13 = vector.multi_reduction <add>, %11, %cst_8 [1] : vector<16x16xf32> to vector<16xf32>
    %14 = vector.shape_cast %13 : vector<16xf32> to vector<16x1xf32>
    %15 = math.rsqrt %14 : vector<16x1xf32>
    %16 = vector.broadcast %15 : vector<16x1xf32> to vector<16x16xf32>
    %17 = arith.mulf %11, %16 : vector<16x16xf32>
    %18 = vector.broadcast %15 : vector<16x1xf32> to vector<16x8xf32>
    %19 = arith.mulf %12, %18 : vector<16x8xf32>
    %cst_9 = arith.constant dense<0.000000e+00> : vector<16x8xf32>
    %20 = tpu.matmul %17, %19, %cst_9 {dimension_numbers = #tpu.dot_dimension_numbers<[1], [0], [0], [1], [0, 0, 1, 1], [], []>} : vector<16x16xf32>, vector<16x8xf32>, vector<16x8xf32> -> vector<16x8xf32>
    %c32 = arith.constant 32 : index
    %c0_10 = arith.constant 0 : index
    %21 = vector.load %arg0[%c32, %c0_10] : memref<192x16xf32, #tpu.memory_space<vmem>>, vector<16x16xf32>
    %c32_11 = arith.constant 32 : index
    %c0_12 = arith.constant 0 : index
    %22 = vector.load %arg1[%c32_11, %c0_12] : memref<192x8xf32, #tpu.memory_space<vmem>>, vector<16x8xf32>
    %cst_13 = arith.constant dense<0.000000e+00> : vector<16xf32>
    %23 = vector.multi_reduction <add>, %21, %cst_13 [1] : vector<16x16xf32> to vector<16xf32>
    %24 = vector.shape_cast %23 : vector<16xf32> to vector<16x1xf32>
    %25 = math.rsqrt %24 : vector<16x1xf32>
    %26 = vector.broadcast %25 : vector<16x1xf32> to vector<16x16xf32>
    %27 = arith.mulf %21, %26 : vector<16x16xf32>
    %28 = vector.broadcast %25 : vector<16x1xf32> to vector<16x8xf32>
    %29 = arith.mulf %22, %28 : vector<16x8xf32>
    %cst_14 = arith.constant dense<0.000000e+00> : vector<16x8xf32>
    %30 = tpu.matmul %27, %29, %cst_14 {dimension_numbers = #tpu.dot_dimension_numbers<[1], [0], [0], [1], [0, 0, 1, 1], [], []>} : vector<16x16xf32>, vector<16x8xf32>, vector<16x8xf32> -> vector<16x8xf32>
    %c48 = arith.constant 48 : index
    %c0_15 = arith.constant 0 : index
    %31 = vector.load %arg0[%c48, %c0_15] : memref<192x16xf32, #tpu.memory_space<vmem>>, vector<16x16xf32>
    %c48_16 = arith.constant 48 : index
    %c0_17 = arith.constant 0 : index
    %32 = vector.load %arg1[%c48_16, %c0_17] : memref<192x8xf32, #tpu.memory_space<vmem>>, vector<16x8xf32>
    %cst_18 = arith.constant dense<0.000000e+00> : vector<16xf32>
    %33 = vector.multi_reduction <add>, %31, %cst_18 [1] : vector<16x16xf32> to vector<16xf32>
    %34 = vector.shape_cast %33 : vector<16xf32> to vector<16x1xf32>
    %35 = math.rsqrt %34 : vector<16x1xf32>
    %36 = vector.broadcast %35 : vector<16x1xf32> to vector<16x16xf32>
    %37 = arith.mulf %31, %36 : vector<16x16xf32>
    %38 = vector.broadcast %35 : vector<16x1xf32> to vector<16x8xf32>
    %39 = arith.mulf %32, %38 : vector<16x8xf32>
    %cst_19 = arith.constant dense<0.000000e+00> : vector<16x8xf32>
    %40 = tpu.matmul %37, %39, %cst_19 {dimension_numbers = #tpu.dot_dimension_numbers<[1], [0], [0], [1], [0, 0, 1, 1], [], []>} : vector<16x16xf32>, vector<16x8xf32>, vector<16x8xf32> -> vector<16x8xf32>
    %41 = tpu.concatenate %10, %20, %30, %40 in 0 : vector<16x8xf32>, vector<16x8xf32>, vector<16x8xf32>, vector<16x8xf32> -> vector<64x8xf32>
    %c0_20 = arith.constant 0 : index
    %c0_21 = arith.constant 0 : index
    %42 = vector.load %arg2[%c0_20, %c0_21] : memref<24x24xf32, #tpu.memory_space<vmem>>, vector<8x24xf32>
    %cst_22 = arith.constant dense<0.000000e+00> : vector<64x24xf32>
    %43 = tpu.matmul %41, %42, %cst_22 {dimension_numbers = #tpu.dot_dimension_numbers<[1], [0], [0], [1], [0, 0, 1, 1], [], []>} : vector<64x8xf32>, vector<8x24xf32>, vector<64x24xf32> -> vector<64x24xf32>
    %44 = arith.addf %0, %43 : vector<64x24xf32>
    %c64 = arith.constant 64 : index
    %c0_23 = arith.constant 0 : index
    %45 = vector.load %arg0[%c64, %c0_23] : memref<192x16xf32, #tpu.memory_space<vmem>>, vector<16x16xf32>
    %c64_24 = arith.constant 64 : index
    %c0_25 = arith.constant 0 : index
    %46 = vector.load %arg1[%c64_24, %c0_25] : memref<192x8xf32, #tpu.memory_space<vmem>>, vector<16x8xf32>
    %cst_26 = arith.constant dense<0.000000e+00> : vector<16xf32>
    %47 = vector.multi_reduction <add>, %45, %cst_26 [1] : vector<16x16xf32> to vector<16xf32>
    %48 = vector.shape_cast %47 : vector<16xf32> to vector<16x1xf32>
    %49 = math.rsqrt %48 : vector<16x1xf32>
    %50 = vector.broadcast %49 : vector<16x1xf32> to vector<16x16xf32>
    %51 = arith.mulf %45, %50 : vector<16x16xf32>
    %52 = vector.broadcast %49 : vector<16x1xf32> to vector<16x8xf32>
    %53 = arith.mulf %46, %52 : vector<16x8xf32>
    %cst_27 = arith.constant dense<0.000000e+00> : vector<16x8xf32>
    %54 = tpu.matmul %51, %53, %cst_27 {dimension_numbers = #tpu.dot_dimension_numbers<[1], [0], [0], [1], [0, 0, 1, 1], [], []>} : vector<16x16xf32>, vector<16x8xf32>, vector<16x8xf32> -> vector<16x8xf32>
    %c80 = arith.constant 80 : index
    %c0_28 = arith.constant 0 : index
    %55 = vector.load %arg0[%c80, %c0_28] : memref<192x16xf32, #tpu.memory_space<vmem>>, vector<16x16xf32>
    %c80_29 = arith.constant 80 : index
    %c0_30 = arith.constant 0 : index
    %56 = vector.load %arg1[%c80_29, %c0_30] : memref<192x8xf32, #tpu.memory_space<vmem>>, vector<16x8xf32>
    %cst_31 = arith.constant dense<0.000000e+00> : vector<16xf32>
    %57 = vector.multi_reduction <add>, %55, %cst_31 [1] : vector<16x16xf32> to vector<16xf32>
    %58 = vector.shape_cast %57 : vector<16xf32> to vector<16x1xf32>
    %59 = math.rsqrt %58 : vector<16x1xf32>
    %60 = vector.broadcast %59 : vector<16x1xf32> to vector<16x16xf32>
    %61 = arith.mulf %55, %60 : vector<16x16xf32>
    %62 = vector.broadcast %59 : vector<16x1xf32> to vector<16x8xf32>
    %63 = arith.mulf %56, %62 : vector<16x8xf32>
    %cst_32 = arith.constant dense<0.000000e+00> : vector<16x8xf32>
    %64 = tpu.matmul %61, %63, %cst_32 {dimension_numbers = #tpu.dot_dimension_numbers<[1], [0], [0], [1], [0, 0, 1, 1], [], []>} : vector<16x16xf32>, vector<16x8xf32>, vector<16x8xf32> -> vector<16x8xf32>
    %c96 = arith.constant 96 : index
    %c0_33 = arith.constant 0 : index
    %65 = vector.load %arg0[%c96, %c0_33] : memref<192x16xf32, #tpu.memory_space<vmem>>, vector<16x16xf32>
    %c96_34 = arith.constant 96 : index
    %c0_35 = arith.constant 0 : index
    %66 = vector.load %arg1[%c96_34, %c0_35] : memref<192x8xf32, #tpu.memory_space<vmem>>, vector<16x8xf32>
    %cst_36 = arith.constant dense<0.000000e+00> : vector<16xf32>
    %67 = vector.multi_reduction <add>, %65, %cst_36 [1] : vector<16x16xf32> to vector<16xf32>
    %68 = vector.shape_cast %67 : vector<16xf32> to vector<16x1xf32>
    %69 = math.rsqrt %68 : vector<16x1xf32>
    %70 = vector.broadcast %69 : vector<16x1xf32> to vector<16x16xf32>
    %71 = arith.mulf %65, %70 : vector<16x16xf32>
    %72 = vector.broadcast %69 : vector<16x1xf32> to vector<16x8xf32>
    %73 = arith.mulf %66, %72 : vector<16x8xf32>
    %cst_37 = arith.constant dense<0.000000e+00> : vector<16x8xf32>
    %74 = tpu.matmul %71, %73, %cst_37 {dimension_numbers = #tpu.dot_dimension_numbers<[1], [0], [0], [1], [0, 0, 1, 1], [], []>} : vector<16x16xf32>, vector<16x8xf32>, vector<16x8xf32> -> vector<16x8xf32>
    %c112 = arith.constant 112 : index
    %c0_38 = arith.constant 0 : index
    %75 = vector.load %arg0[%c112, %c0_38] : memref<192x16xf32, #tpu.memory_space<vmem>>, vector<16x16xf32>
    %c112_39 = arith.constant 112 : index
    %c0_40 = arith.constant 0 : index
    %76 = vector.load %arg1[%c112_39, %c0_40] : memref<192x8xf32, #tpu.memory_space<vmem>>, vector<16x8xf32>
    %cst_41 = arith.constant dense<0.000000e+00> : vector<16xf32>
    %77 = vector.multi_reduction <add>, %75, %cst_41 [1] : vector<16x16xf32> to vector<16xf32>
    %78 = vector.shape_cast %77 : vector<16xf32> to vector<16x1xf32>
    %79 = math.rsqrt %78 : vector<16x1xf32>
    %80 = vector.broadcast %79 : vector<16x1xf32> to vector<16x16xf32>
    %81 = arith.mulf %75, %80 : vector<16x16xf32>
    %82 = vector.broadcast %79 : vector<16x1xf32> to vector<16x8xf32>
    %83 = arith.mulf %76, %82 : vector<16x8xf32>
    %cst_42 = arith.constant dense<0.000000e+00> : vector<16x8xf32>
    %84 = tpu.matmul %81, %83, %cst_42 {dimension_numbers = #tpu.dot_dimension_numbers<[1], [0], [0], [1], [0, 0, 1, 1], [], []>} : vector<16x16xf32>, vector<16x8xf32>, vector<16x8xf32> -> vector<16x8xf32>
    %85 = tpu.concatenate %54, %64, %74, %84 in 0 : vector<16x8xf32>, vector<16x8xf32>, vector<16x8xf32>, vector<16x8xf32> -> vector<64x8xf32>
    %c8 = arith.constant 8 : index
    %c0_43 = arith.constant 0 : index
    %86 = vector.load %arg2[%c8, %c0_43] : memref<24x24xf32, #tpu.memory_space<vmem>>, vector<8x24xf32>
    %cst_44 = arith.constant dense<0.000000e+00> : vector<64x24xf32>
    %87 = tpu.matmul %85, %86, %cst_44 {dimension_numbers = #tpu.dot_dimension_numbers<[1], [0], [0], [1], [0, 0, 1, 1], [], []>} : vector<64x8xf32>, vector<8x24xf32>, vector<64x24xf32> -> vector<64x24xf32>
    %88 = arith.addf %44, %87 : vector<64x24xf32>
    %c128 = arith.constant 128 : index
    %c0_45 = arith.constant 0 : index
    %89 = vector.load %arg0[%c128, %c0_45] : memref<192x16xf32, #tpu.memory_space<vmem>>, vector<16x16xf32>
    %c128_46 = arith.constant 128 : index
    %c0_47 = arith.constant 0 : index
    %90 = vector.load %arg1[%c128_46, %c0_47] : memref<192x8xf32, #tpu.memory_space<vmem>>, vector<16x8xf32>
    %cst_48 = arith.constant dense<0.000000e+00> : vector<16xf32>
    %91 = vector.multi_reduction <add>, %89, %cst_48 [1] : vector<16x16xf32> to vector<16xf32>
    %92 = vector.shape_cast %91 : vector<16xf32> to vector<16x1xf32>
    %93 = math.rsqrt %92 : vector<16x1xf32>
    %94 = vector.broadcast %93 : vector<16x1xf32> to vector<16x16xf32>
    %95 = arith.mulf %89, %94 : vector<16x16xf32>
    %96 = vector.broadcast %93 : vector<16x1xf32> to vector<16x8xf32>
    %97 = arith.mulf %90, %96 : vector<16x8xf32>
    %cst_49 = arith.constant dense<0.000000e+00> : vector<16x8xf32>
    %98 = tpu.matmul %95, %97, %cst_49 {dimension_numbers = #tpu.dot_dimension_numbers<[1], [0], [0], [1], [0, 0, 1, 1], [], []>} : vector<16x16xf32>, vector<16x8xf32>, vector<16x8xf32> -> vector<16x8xf32>
    %c144 = arith.constant 144 : index
    %c0_50 = arith.constant 0 : index
    %99 = vector.load %arg0[%c144, %c0_50] : memref<192x16xf32, #tpu.memory_space<vmem>>, vector<16x16xf32>
    %c144_51 = arith.constant 144 : index
    %c0_52 = arith.constant 0 : index
    %100 = vector.load %arg1[%c144_51, %c0_52] : memref<192x8xf32, #tpu.memory_space<vmem>>, vector<16x8xf32>
    %cst_53 = arith.constant dense<0.000000e+00> : vector<16xf32>
    %101 = vector.multi_reduction <add>, %99, %cst_53 [1] : vector<16x16xf32> to vector<16xf32>
    %102 = vector.shape_cast %101 : vector<16xf32> to vector<16x1xf32>
    %103 = math.rsqrt %102 : vector<16x1xf32>
    %104 = vector.broadcast %103 : vector<16x1xf32> to vector<16x16xf32>
    %105 = arith.mulf %99, %104 : vector<16x16xf32>
    %106 = vector.broadcast %103 : vector<16x1xf32> to vector<16x8xf32>
    %107 = arith.mulf %100, %106 : vector<16x8xf32>
    %cst_54 = arith.constant dense<0.000000e+00> : vector<16x8xf32>
    %108 = tpu.matmul %105, %107, %cst_54 {dimension_numbers = #tpu.dot_dimension_numbers<[1], [0], [0], [1], [0, 0, 1, 1], [], []>} : vector<16x16xf32>, vector<16x8xf32>, vector<16x8xf32> -> vector<16x8xf32>
    %c160 = arith.constant 160 : index
    %c0_55 = arith.constant 0 : index
    %109 = vector.load %arg0[%c160, %c0_55] : memref<192x16xf32, #tpu.memory_space<vmem>>, vector<16x16xf32>
    %c160_56 = arith.constant 160 : index
    %c0_57 = arith.constant 0 : index
    %110 = vector.load %arg1[%c160_56, %c0_57] : memref<192x8xf32, #tpu.memory_space<vmem>>, vector<16x8xf32>
    %cst_58 = arith.constant dense<0.000000e+00> : vector<16xf32>
    %111 = vector.multi_reduction <add>, %109, %cst_58 [1] : vector<16x16xf32> to vector<16xf32>
    %112 = vector.shape_cast %111 : vector<16xf32> to vector<16x1xf32>
    %113 = math.rsqrt %112 : vector<16x1xf32>
    %114 = vector.broadcast %113 : vector<16x1xf32> to vector<16x16xf32>
    %115 = arith.mulf %109, %114 : vector<16x16xf32>
    %116 = vector.broadcast %113 : vector<16x1xf32> to vector<16x8xf32>
    %117 = arith.mulf %110, %116 : vector<16x8xf32>
    %cst_59 = arith.constant dense<0.000000e+00> : vector<16x8xf32>
    %118 = tpu.matmul %115, %117, %cst_59 {dimension_numbers = #tpu.dot_dimension_numbers<[1], [0], [0], [1], [0, 0, 1, 1], [], []>} : vector<16x16xf32>, vector<16x8xf32>, vector<16x8xf32> -> vector<16x8xf32>
    %c176 = arith.constant 176 : index
    %c0_60 = arith.constant 0 : index
    %119 = vector.load %arg0[%c176, %c0_60] : memref<192x16xf32, #tpu.memory_space<vmem>>, vector<16x16xf32>
    %c176_61 = arith.constant 176 : index
    %c0_62 = arith.constant 0 : index
    %120 = vector.load %arg1[%c176_61, %c0_62] : memref<192x8xf32, #tpu.memory_space<vmem>>, vector<16x8xf32>
    %cst_63 = arith.constant dense<0.000000e+00> : vector<16xf32>
    %121 = vector.multi_reduction <add>, %119, %cst_63 [1] : vector<16x16xf32> to vector<16xf32>
    %122 = vector.shape_cast %121 : vector<16xf32> to vector<16x1xf32>
    %123 = math.rsqrt %122 : vector<16x1xf32>
    %124 = vector.broadcast %123 : vector<16x1xf32> to vector<16x16xf32>
    %125 = arith.mulf %119, %124 : vector<16x16xf32>
    %126 = vector.broadcast %123 : vector<16x1xf32> to vector<16x8xf32>
    %127 = arith.mulf %120, %126 : vector<16x8xf32>
    %cst_64 = arith.constant dense<0.000000e+00> : vector<16x8xf32>
    %128 = tpu.matmul %125, %127, %cst_64 {dimension_numbers = #tpu.dot_dimension_numbers<[1], [0], [0], [1], [0, 0, 1, 1], [], []>} : vector<16x16xf32>, vector<16x8xf32>, vector<16x8xf32> -> vector<16x8xf32>
    %129 = tpu.concatenate %98, %108, %118, %128 in 0 : vector<16x8xf32>, vector<16x8xf32>, vector<16x8xf32>, vector<16x8xf32> -> vector<64x8xf32>
    %c16_65 = arith.constant 16 : index
    %c0_66 = arith.constant 0 : index
    %130 = vector.load %arg2[%c16_65, %c0_66] : memref<24x24xf32, #tpu.memory_space<vmem>>, vector<8x24xf32>
    %cst_67 = arith.constant dense<0.000000e+00> : vector<64x24xf32>
    %131 = tpu.matmul %129, %130, %cst_67 {dimension_numbers = #tpu.dot_dimension_numbers<[1], [0], [0], [1], [0, 0, 1, 1], [], []>} : vector<64x8xf32>, vector<8x24xf32>, vector<64x24xf32> -> vector<64x24xf32>
    %132 = arith.addf %88, %131 : vector<64x24xf32>
    %c0_68 = arith.constant 0 : index
    %c0_69 = arith.constant 0 : index
    %133 = vector.load %arg3[%c0_68, %c0_69] : memref<64x24xf32, #tpu.memory_space<vmem>>, vector<64x24xf32>
    tpu.vector_store %arg3[%c0_68, %c0_69], %132 {strides = array<i32>} : memref<64x24xf32, #tpu.memory_space<vmem>>, vector<64x24xf32>,
    return
  }
}

</mosaic_0001>

<bundles_post_ra>
// kernel: generator_forward.1
= control target key start
LH: loop header
LB: loop body
LE: loop exit
PB: predicated region body
PF: predicated region fallthrough
CT: control target
= control target key end

     0   :  { %vm18_vm0 = vcmask 130048   ;;  %s1855_s0 = inlined_call_operand.vmem [shape: f32[192,16], index: 0, kind: input, shape index: {}]   ;;  %s1856_s1 = inlined_call_operand.vmem [shape: f32[192,8], index: 1, kind: input, shape index: {}]   ;;  %s1857_s2 = inlined_call_operand.vmem [shape: f32[24,24], index: 2, kind: input, shape index: {}]   ;;  %s1858_s3 = inlined_call_operand.vmem [shape: f32[64,24], index: 3, kind: output, shape index: {}]  }
   0x1   :  { %v1111_v0 = vld [vmem:[%s1855_s0 + $0x38] sm:$0xff]  ;;  %v1116_v1 = vld [vmem:[%s1855_s0 + $0x28] sm:$0xff]  ;;  %v1137_v7 = vld [vmem:[%s1855_s0 + $0x20] sm:$0xff] }
   0x2   :  { %v1121_v2 = vld [vmem:[%s1855_s0 + $0x8] sm:$0xff]  ;;  %v211_v3 = vsel %vm18_vm0, %v1111_v0, 0.0  ;;  %v148_v4 = vsel %vm18_vm0, %v1116_v1, 0.0  ;;  %v1142_v8 = vld [vmem:[%s1855_s0] sm:$0xff]  ;;  %v145_v10 = vsel %vm18_vm0, %v1137_v7, 0.0  ;;  %v1153_v12 = vld [vmem:[%s1855_s0 + $0x30] sm:$0xff] }
   0x3   :  { %v22_v5 = vsel %vm18_vm0, %v1121_v2, 0.0  ;;  %212 = vadd.xlane.f32.xlu2 %v211_v3  ;;  %149 = vadd.xlane.f32.xlu0 %v148_v4  ;;  %v1132_v6 = vld [vmem:[%s1855_s0 + $0x68] sm:$0xff]  ;;  %v19_v11 = vsel %vm18_vm0, %v1142_v8, 0.0  ;;  %v1158_v13 = vld [vmem:[%s1855_s0 + $0x18] sm:$0xff]  ;;  %v1163_v14 = vld [vmem:[%s1855_s0 + $0x60] sm:$0xff]  ;;  %v208_v15 = vsel %vm18_vm0, %v1153_v12, 0.0 }
   0x4   :  { %23 = vadd.xlane.f32.xlu1 %v22_v5  ;;  %v401_v9 = vsel %vm18_vm0, %v1132_v6, 0.0  ;;  %v85_v16 = vsel %vm18_vm0, %v1158_v13, 0.0  ;;  %v398_v17 = vsel %vm18_vm0, %v1163_v14, 0.0  ;;  %v1174_v18 = vld [vmem:[%s1855_s0 + $0x48] sm:$0xff]  ;;  %v1179_v19 = vld [vmem:[%s1855_s0 + $0x40] sm:$0xff]  ;;  %v1184_v20 = vld [vmem:[%s1855_s0 + $0x10] sm:$0xff] }
   0x5   :  { %v275_v21 = vsel %vm18_vm0, %v1174_v18, 0.0  ;;  %v272_v22 = vsel %vm18_vm0, %v1179_v19, 0.0  ;;  %v82_v23 = vsel %vm18_vm0, %v1184_v20, 0.0  ;;  %v1195_v24 = vld [vmem:[%s1855_s0 + $0x78] sm:$0xff]  ;;  %v1200_v25 = vld [vmem:[%s1855_s0 + $0x70] sm:$0xff]  ;;  %v1205_v26 = vld [vmem:[%s1855_s0 + $0x88] sm:$0xff] }
   0x6   :  { %v464_v27 = vsel %vm18_vm0, %v1195_v24, 0.0  ;;  %v461_v28 = vsel %vm18_vm0, %v1200_v25, 0.0  ;;  %v659_v29 = vsel %vm18_vm0, %v1205_v26, 0.0  ;;  %v1216_v30 = vld [vmem:[%s1855_s0 + $0x80] sm:$0xff]  ;;  %v1221_v31 = vld [vmem:[%s1855_s0 + $0x50] sm:$0xff]  ;;  %v1226_v32 = vld [vmem:[%s1855_s0 + $0x58] sm:$0xff] }
   0x7   :  { %v656_v33 = vsel %vm18_vm0, %v1216_v30, 0.0  ;;  %v335_v34 = vsel %vm18_vm0, %v1221_v31, 0.0  ;;  %v338_v35 = vsel %vm18_vm0, %v1226_v32, 0.0  ;;  %v1237_v36 = vld [vmem:[%s1855_s0 + $0x98] sm:$0xff]  ;;  %v1242_v37 = vld [vmem:[%s1855_s0 + $0x90] sm:$0xff]  ;;  %v1247_v38 = vld [vmem:[%s1855_s0 + $0xa8] sm:$0xff] }
   0x8   :  { %v722_v39 = vsel %vm18_vm0, %v1237_v36, 0.0  ;;  %v719_v40 = vsel %vm18_vm0, %v1242_v37, 0.0  ;;  %v785_v41 = vsel %vm18_vm0, %v1247_v38, 0.0  ;;  %v1258_v42 = vld [vmem:[%s1855_s0 + $0xa0] sm:$0xff]  ;;  %v1263_v43 = vld [vmem:[%s1855_s0 + $0xb0] sm:$0xff]  ;;  %v1268_v44 = vld [vmem:[%s1855_s0 + $0xb8] sm:$0xff] }
   0x9   :  { %v782_v45 = vsel %vm18_vm0, %v1258_v42, 0.0  ;;  %v845_v46 = vsel %vm18_vm0, %v1263_v43, 0.0  ;;  %v848_v47 = vsel %vm18_vm0, %v1268_v44, 0.0 }
   0xb   :  { %402 = vadd.xlane.f32.xlu2 %v401_v9  ;;  %146 = vadd.xlane.f32.xlu0 %v145_v10 }
   0xc   :  { %20 = vadd.xlane.f32.xlu1 %v19_v11 }
  0x13   :  { %209 = vadd.xlane.f32.xlu0 %v208_v15  ;;  %86 = vadd.xlane.f32.xlu2 %v85_v16 }
  0x14   :  { %399 = vadd.xlane.f32.xlu1 %v398_v17 }
  0x1b   :  { %276 = vadd.xlane.f32.xlu0 %v275_v21  ;;  %273 = vadd.xlane.f32.xlu2 %v272_v22 }
  0x1c   :  { %83 = vadd.xlane.f32.xlu1 %v82_v23 }
  0x23   :  { %465 = vadd.xlane.f32.xlu0 %v464_v27  ;;  %462 = vadd.xlane.f32.xlu2 %v461_v28 }
  0x24   :  { %660 = vadd.xlane.f32.xlu1 %v659_v29 }
  0x2b   :  { %657 = vadd.xlane.f32.xlu0 %v656_v33  ;;  %336 = vadd.xlane.f32.xlu2 %v335_v34 }
  0x2c   :  { %339 = vadd.xlane.f32.xlu1 %v338_v35 }
  0x33   :  { %723 = vadd.xlane.f32.xlu0 %v722_v39  ;;  %720 = vadd.xlane.f32.xlu2 %v719_v40  ;;  %v17_v40 = vld [vmem:[%s1856_s1 + $0x8] sm:$0xff] }
  0x34   :  { %786 = vadd.xlane.f32.xlu1 %v785_v41 }
  0x3b   :  { %783 = vadd.xlane.f32.xlu0 %v782_v45  ;;  %846 = vadd.xlane.f32.xlu2 %v845_v46 }
  0x3c   :  { %849 = vadd.xlane.f32.xlu1 %v848_v47  ;;  %v144_v47 = vld [vmem:[%s1856_s1 + $0x28] sm:$0xff] }
  0x76   :  { %v213_v48 = vpop.xlane.xlu2 %212  ;;  %v150_v49 = vpop.xlane.xlu0 %149 }
  0x77   :  { %1040 = vrsqrt.f32 %v213_v48  ;;  %v24_v50 = vpop.xlane.xlu1 %23  ;;  %vm230_vm1 = vweird.f32 %v213_v48  ;;  %vm167_vm6 = vweird.f32 %v150_v49 }
  0x78   :  { %1042 = vrsqrt.f32 %v150_v49  ;;  %vm41_vm2 = vweird.f32 %v24_v50 }
  0x79   :  { %1044 = vrsqrt.f32 %v24_v50 }
  0x7d   :  { %v1041_v51 = vpop.eup %1040 }
  0x7e   :  { %v1043_v52 = vpop.eup %1042  ;;  %v225_v53 = vmul.f32 %v1041_v51, %v213_v48  ;;  %v1276_v54 = vpop.xlane.xlu2 %402  ;;  %vm231_vm3 = vweird.f32 %v1041_v51 }
  0x7f   :  { %v1278_v55 = vpop.xlane.xlu0 %146  ;;  %v1045_v56 = vpop.eup %1044  ;;  %v162_v57 = vmul.f32 %v1043_v52, %v150_v49  ;;  %1046 = vrsqrt.f32 %v1276_v54  ;;  %vm168_vm5 = vweird.f32 %v1043_v52  ;;  %vm232_vm7 = vmor %vm230_vm1, %vm231_vm3  ;;  %vm420_vm10 = vweird.f32 %v1276_v54 }
  0x80   :  { %v1281_v58 = vpop.xlane.xlu1 %20  ;;  %v226_v59 = vmul.f32 %v1041_v51, %v225_v53  ;;  %v36_v60 = vmul.f32 %v1045_v56, %v24_v50  ;;  %1048 = vrsqrt.f32 %v1278_v55  ;;  %vm42_vm4 = vweird.f32 %v1045_v56  ;;  %vm169_vm9 = vmor %vm167_vm6, %vm168_vm5 }
  0x81   :  { %v163_v61 = vmul.f32 %v1043_v52, %v162_v57  ;;  %1050 = vrsqrt.f32 %v1281_v58  ;;  %vm43_vm8 = vmor %vm41_vm2, %vm42_vm4  ;;  %v207_v57 = vld [vmem:[%s1856_s1 + $0x38] sm:$0xff]  ;;  %vm31_vm11 = vweird.f32 %v1281_v58  ;;  %vm157_vm13 = vweird.f32 %v1278_v55 }
  0x82   :  { %v227_v62 = vmul.f32 0.5, %v226_v59  ;;  %v37_v63 = vmul.f32 %v1045_v56, %v36_v60 }
  0x83   :  { %v164_v3 = vmul.f32 0.5, %v163_v61 }
  0x84   :  { %v228_v4 = vsub.f32 1.5, %v227_v62  ;;  %v38_v5 = vmul.f32 0.5, %v37_v63 }
  0x85   :  { %v1285_v9 = vpop.eup %1046  ;;  %v165_v11 = vsub.f32 1.5, %v164_v3 }
  0x86   :  { %v1287_v10 = vpop.eup %1048  ;;  %v39_v15 = vsub.f32 1.5, %v38_v5  ;;  %v415_v16 = vmul.f32 %v1285_v9, %v1276_v54  ;;  %v1293_v21 = vpop.xlane.xlu2 %86  ;;  %v229_v33 = vmul.f32 %v1041_v51, %v228_v4  ;;  %vm421_vm15 = vweird.f32 %v1285_v9 }
  0x87   :  { %v1291_v17 = vpop.xlane.xlu0 %209  ;;  %v1295_v22 = vpop.eup %1050  ;;  %v152_v23 = vmul.f32 %v1287_v10, %v1278_v55  ;;  %v166_v45 = vmul.f32 %v1043_v52, %v165_v11  ;;  %vm158_vm14 = vweird.f32 %v1287_v10  ;;  %vm422_vm3 = vmor %vm420_vm10, %vm421_vm15  ;;  %vm104_vm4 = vweird.f32 %v1293_v21 }
  0x88   :  { %1052 = vrsqrt.f32 %v1291_v17  ;;  %v1300_v27 = vpop.xlane.xlu1 %399  ;;  %v416_v28 = vmul.f32 %v1285_v9, %v415_v16  ;;  %v26_v29 = vmul.f32 %v1295_v22, %v1281_v58  ;;  %v40_v41 = vmul.f32 %v1045_v56, %v39_v15  ;;  %vm159_vm2 = vmor %vm157_vm13, %vm158_vm14 }
  0x89   :  { %1054 = vrsqrt.f32 %v1293_v21  ;;  %v153_v34 = vmul.f32 %v1287_v10, %v152_v23  ;;  %v1321_v53 = vsel %vm169_vm9, %v1043_v52, %v166_v45  ;;  %v1326_v59 = vsel %vm232_vm7, %v1041_v51, %v229_v33 }
  0x8a   :  { %1056 = vrsqrt.f32 %v1300_v27  ;;  %v417_v35 = vmul.f32 0.5, %v416_v28  ;;  %v27_v39 = vmul.f32 %v1295_v22, %v26_v29  ;;  %v1319_v49 = vsel %vm43_vm8, %v1045_v56, %v40_v41 }
  0x8b   :  { %v154_v46 = vmul.f32 0.5, %v153_v34  ;;  %v48_v60 = vmul.f32 %v1319_v49, %v17_v40  ;;  %v174_v56 = vmul.f32 %v1321_v53, %v144_v47  ;;  %v237_v15 = vmul.f32 %v1326_v59, %v207_v57 }
  0x8c   :  { %v28_v48 = vmul.f32 0.5, %v27_v39  ;;  %v418_v62 = vsub.f32 1.5, %v417_v35  ;;  %vm32_vm12 = vweird.f32 %v1295_v22  ;;  %v16_v35 = vld [vmem:[%s1856_s1] sm:$0xff]  ;;  %vm220_vm7 = vweird.f32 %v1291_v17 }
  0x8d   :  { %v155_v5 = vsub.f32 1.5, %v154_v46  ;;  %69 = vmatpush.msra.mxu0 %v48_v60  ;;  %195 = vmatpush.msra.mxu2 %v174_v56  ;;  %vm33_vm1 = vmor %vm31_vm11, %vm32_vm12  ;;  %vm410_vm8 = vweird.f32 %v1300_v27 }
  0x8e   :  { %v1328_v50 = vpop.eup %1052  ;;  %v29_v63 = vsub.f32 1.5, %v28_v48  ;;  %v1339_v4 = vpop.xlane.xlu2 %273  ;;  %258 = vmatpush.msra.mxu3 %v237_v15  ;;  %v419_v45 = vmul.f32 %v1285_v9, %v418_v62  ;;  %v143_v48 = vld [vmem:[%s1856_s1 + $0x20] sm:$0xff] }
  0x8f   :  { %v1332_v61 = vpop.eup %1054  ;;  %v215_v52 = vmul.f32 %v1328_v50, %v1291_v17  ;;  %v1337_v3 = vpop.xlane.xlu0 %276  ;;  %v156_v41 = vmul.f32 %v1287_v10, %v155_v5  ;;  %vm221_vm5 = vweird.f32 %v1328_v50  ;;  %vm284_vm13 = vweird.f32 %v1339_v4 }
  0x90   :  { %v1341_v51 = vpop.eup %1056  ;;  %v99_v11 = vmul.f32 %v1332_v61, %v1293_v21  ;;  %1058 = vrsqrt.f32 %v1337_v3  ;;  %v1347_v16 = vpop.xlane.xlu1 %83  ;;  %v30_v39 = vmul.f32 %v1295_v22, %v29_v63  ;;  %vm105_vm6 = vweird.f32 %v1332_v61  ;;  %vm1421_vm9 = vmor %vm220_vm7, %vm221_vm5 }
  0x91   :  { %v216_v23 = vmul.f32 %v1328_v50, %v215_v52  ;;  %v405_v28 = vmul.f32 %v1341_v51, %v1300_v27  ;;  %1060 = vrsqrt.f32 %v1339_v4  ;;  %v160_v63 = vsel %vm159_vm2, %v1287_v10, %v156_v41  ;;  %v397_v52 = vld [vmem:[%s1856_s1 + $0x68] sm:$0xff]  ;;  %vm106_vm11 = vmor %vm104_vm4, %vm105_vm6 }
  0x92   :  { %v100_v29 = vmul.f32 %v1332_v61, %v99_v11  ;;  %1062 = vrsqrt.f32 %v1347_v16  ;;  %v34_v47 = vsel %vm33_vm1, %v1295_v22, %v30_v39  ;;  %v171_v22 = vmul.f32 %v160_v63, %v1137_v7 }
  0x93   :  { %v217_v33 = vmul.f32 0.5, %v216_v23  ;;  %v406_v34 = vmul.f32 %v1341_v51, %v405_v28  ;;  %v45_v58 = vmul.f32 %v34_v47, %v1142_v8  ;;  %v47_v60 = vmul.f32 %v34_v47, %v16_v35  ;;  %v81_v47 = vld [vmem:[%s1856_s1 + $0x18] sm:$0xff] }
  0x94   :  { %v101_v40 = vmul.f32 0.5, %v100_v29  ;;  %v173_v5 = vmul.f32 %v160_v63, %v143_v48  ;;  %v1397_v11 = vsel %vm422_vm3, %v1285_v9, %v419_v45  ;;  %v46_v39 = vmul.f32 %v1319_v49, %v1121_v2  ;;  %v206_v2 = vld [vmem:[%s1856_s1 + $0x30] sm:$0xff] }
  0x95   :  { %v407_v46 = vmul.f32 0.5, %v406_v34  ;;  %v218_v62 = vsub.f32 1.5, %v217_v33  ;;  %70 = vmatpush.msra.mxu0 %v47_v60  ;;  %v427_v33 = vmul.f32 %v1397_v11, %v397_v52  ;;  %vm411_vm10 = vweird.f32 %v1341_v51 }
  0x96   :  { %v1377_v57 = vpop.eup %1058  ;;  %v1392_v8 = vpop.xlane.xlu2 %462  ;;  %v102_v54 = vsub.f32 1.5, %v101_v40  ;;  %991 = vmatmul.msk.f32.vlgmr.msra.gmra.mxu0 %vm18_vm0, %v45_v58  ;;  %196 = vmatpush.msra.mxu2 %v173_v5  ;;  %v172_v45 = vmul.f32 %v1321_v53, %v1116_v1  ;;  %v1452_v21 = vmul.f32 %v1326_v59, %v1111_v0  ;;  %vm294_vm12 = vweird.f32 %v1337_v3  ;;  %vm412_vm14 = vmor %vm410_vm8, %vm411_vm10 }
  0x97   :  { %v289_v55 = vmul.f32 %v1377_v57, %v1337_v3  ;;  %v1390_v56 = vpop.xlane.xlu0 %465  ;;  %v1394_v10 = vpop.eup %1060  ;;  %v408_v23 = vsub.f32 1.5, %v407_v46  ;;  %995 = vmatmul.msk.f32.vlgmr.msra.gmra.mxu2 %vm18_vm0, %v171_v22  ;;  %v219_v41 = vmul.f32 %v1328_v50, %v218_v62  ;;  %v396_v62 = vld [vmem:[%s1856_s1 + $0x60] sm:$0xff]  ;;  %vm94_vm15 = vweird.f32 %v1347_v16 }
  0x98   :  { %1064 = vrsqrt.f32 %v1390_v56  ;;  %v1400_v15 = vpop.xlane.xlu1 %660  ;;  %v1402_v7 = vpop.eup %1062  ;;  %v279_v29 = vmul.f32 %v1394_v10, %v1339_v4  ;;  %448 = vmatpush.msrb.mxu2 %v427_v33  ;;  %v103_v17 = vmul.f32 %v1332_v61, %v102_v54  ;;  %vm295_vm1 = vweird.f32 %v1377_v57 }
  0x99   :  { %v290_v28 = vmul.f32 %v1377_v57, %v289_v55  ;;  %v89_v9 = vmul.f32 %v1402_v7, %v1347_v16  ;;  %1066 = vrsqrt.f32 %v1392_v8  ;;  %v409_v49 = vmul.f32 %v1341_v51, %v408_v23  ;;  %vm296_vm7 = vmor %vm294_vm12, %vm295_vm1 }
  0x9a   :  { %v280_v34 = vmul.f32 %v1394_v10, %v279_v29  ;;  %1068 = vrsqrt.f32 %v1400_v15  ;;  %v107_v53 = vsel %vm106_vm11, %v1332_v61, %v103_v17  ;;  %v223_v60 = vsel %vm1421_vm9, %v1328_v50, %v219_v41  ;;  %v271_v41 = vld [vmem:[%s1856_s1 + $0x48] sm:$0xff] }
  0x9b   :  { %v90_v40 = vmul.f32 %v1402_v7, %v89_v9  ;;  %v291_v46 = vmul.f32 0.5, %v290_v28  ;;  %v111_v0 = vmul.f32 %v107_v53, %v81_v47  ;;  %v234_v59 = vmul.f32 %v223_v60, %v1153_v12 }
  0x9c   :  { %v281_v58 = vmul.f32 0.5, %v280_v34  ;;  %v236_v22 = vmul.f32 %v223_v60, %v206_v2  ;;  %v413_v29 = vsel %vm412_vm14, %v1341_v51, %v409_v49  ;;  %vm95_vm2 = vweird.f32 %v1402_v7 }
  0x9d   :  { %v91_v1 = vmul.f32 0.5, %v90_v40  ;;  %v292_v27 = vsub.f32 1.5, %v291_v46  ;;  %132 = vmatpush.msra.mxu1 %v111_v0  ;;  %v426_v33 = vmul.f32 %v413_v29, %v396_v62  ;;  %vm285_vm3 = vweird.f32 %v1394_v10  ;;  %v80_v40 = vld [vmem:[%s1856_s1 + $0x10] sm:$0xff]  ;;  %vm96_vm6 = vmor %vm94_vm15, %vm95_vm2 }
  0x9e   :  { %v1444_v48 = vpop.eup %1064  ;;  %v1463_v55 = vpop.xlane.xlu2 %336  ;;  %992 = vmatmul.msk.f32.gmra.mxu0 %vm18_vm0, %v46_v39  ;;  %v282_v9 = vsub.f32 1.5, %v281_v58  ;;  %259 = vmatpush.msra.mxu3 %v236_v22  ;;  %v1492_v51 = vmul.f32 %v1397_v11, %v1132_v6  ;;  %vm483_vm4 = vweird.f32 %v1390_v56  ;;  %vm678_vm5 = vweird.f32 %v1400_v15  ;;  %vm286_vm11 = vmor %vm284_vm13, %vm285_vm3 }
  0x9f   :  { %v478_v63 = vmul.f32 %v1444_v48, %v1390_v56  ;;  %v1461_v61 = vpop.xlane.xlu0 %657  ;;  %v1465_v50 = vpop.eup %1066  ;;  %v92_v5 = vsub.f32 1.5, %v91_v1  ;;  %996 = vmatmul.msk.f32.gmra.mxu2 %vm18_vm0, %v172_v45  ;;  %997 = vmatmul.msk.f32.vlgmr.msra.gmra.mxu3 %vm18_vm0, %v234_v59  ;;  %v293_v45 = vmul.f32 %v1377_v57, %v292_v27  ;;  %vm484_vm8 = vweird.f32 %v1444_v48 }
  0xa0   :  { %v1473_v52 = vpop.xlane.xlu1 %339  ;;  %v1475_v54 = vpop.eup %1068  ;;  %v468_v28 = vmul.f32 %v1465_v50, %v1392_v8  ;;  %1070 = vrsqrt.f32 %v1461_v61  ;;  %449 = vmatpush.msrb.mxu2 %v426_v33  ;;  %v283_v46 = vmul.f32 %v1394_v10, %v282_v9  ;;  %vm473_vm9 = vweird.f32 %v1392_v8  ;;  %vm485_vm1 = vmor %vm483_vm4, %vm484_vm8 }
  0xa1   :  { %v479_v23 = vmul.f32 %v1444_v48, %v478_v63  ;;  %v673_v12 = vmul.f32 %v1475_v54, %v1400_v15  ;;  %1072 = vrsqrt.f32 %v1463_v55  ;;  %v93_v6 = vmul.f32 %v1402_v7, %v92_v5 }
  0xa2   :  { %v469_v39 = vmul.f32 %v1465_v50, %v468_v28  ;;  %1074 = vrsqrt.f32 %v1473_v52  ;;  %vm679_vm10 = vweird.f32 %v1475_v54  ;;  %v1521_v16 = vmul.f32 %v107_v53, %v1158_v13  ;;  %v270_v13 = vld [vmem:[%s1856_s1 + $0x40] sm:$0xff] }
  0xa3   :  { %v480_v34 = vmul.f32 0.5, %v479_v23  ;;  %v674_v35 = vmul.f32 %v1475_v54, %v673_v12  ;;  %v97_v47 = vsel %vm96_vm6, %v1402_v7, %v93_v6  ;;  %v297_v60 = vsel %vm296_vm7, %v1377_v57, %v293_v45  ;;  %vm680_vm13 = vmor %vm678_vm5, %vm679_vm10 }
  0xa4   :  { %v108_v58 = vmul.f32 %v97_v47, %v1184_v20  ;;  %v110_v1 = vmul.f32 %v97_v47, %v80_v40  ;;  %v470_v63 = vmul.f32 0.5, %v469_v39  ;;  %v301_v62 = vmul.f32 %v297_v60, %v271_v41 }
  0xa5   :  { %v481_v11 = vsub.f32 1.5, %v480_v34  ;;  %v675_v17 = vmul.f32 0.5, %v674_v35  ;;  %v287_v0 = vsel %vm286_vm11, %v1394_v10, %v283_v46  ;;  %v424_v57 = vmul.f32 %v413_v29, %v1163_v14 }
  0xa6   :  { %v1526_v49 = vpop.xlane.xlu2 %720  ;;  %v1539_v53 = vpop.eup %1070  ;;  %133 = vmatpush.msra.mxu1 %v110_v1  ;;  %vm474_vm12 = vweird.f32 %v1465_v50  ;;  %322 = vmatpush.msrb.mxu0 %v301_v62  ;;  %v298_v14 = vmul.f32 %v287_v0, %v1179_v19  ;;  %v300_v23 = vmul.f32 %v287_v0, %v270_v13  ;;  %vm668_vm14 = vweird.f32 %v1461_v61  ;;  %v460_v19 = vld [vmem:[%s1856_s1 + $0x78] sm:$0xff] }
  0xa7   :  { %v1524_v2 = vpop.xlane.xlu0 %723  ;;  %v676_v3 = vsub.f32 1.5, %v675_v17  ;;  %v1543_v4 = vpop.eup %1072  ;;  %v663_v59 = vmul.f32 %v1539_v53, %v1461_v61  ;;  %v482_v22 = vmul.f32 %v1444_v48, %v481_v11  ;;  %993 = vmatmul.msk.f32.vlgmr.msra.gmra.mxu1 %vm18_vm0, %v108_v58  ;;  %vm357_vm15 = vweird.f32 %v1473_v52  ;;  %998 = vmatmul.msk.f32.gmra.mxu3 %vm18_vm0, %v1452_v21  ;;  %vm475_vm7 = vmor %vm473_vm9, %vm474_vm12  ;;  %v459_v58 = vld [vmem:[%s1856_s1 + $0x70] sm:$0xff] }
  0xa8   :  { %v1537_v7 = vpop.xlane.xlu1 %786  ;;  %1076 = vrsqrt.f32 %v1524_v2  ;;  %v1550_v5 = vpop.eup %1074  ;;  %v342_v10 = vmul.f32 %v1543_v4, %v1463_v55  ;;  %1003 = vmatmul.msk.f32.vlgmr.msrb.gmra.mxu2 %vm18_vm0, %v424_v57  ;;  %v471_v27 = vsub.f32 1.5, %v470_v63  ;;  %v299_v21 = vmul.f32 %v297_v60, %v1174_v18  ;;  %323 = vmatpush.msrb.mxu0 %v300_v23 }
  0xa9   :  { %v677_v20 = vmul.f32 %v1475_v54, %v676_v3  ;;  %v664_v29 = vmul.f32 %v1539_v53, %v663_v59  ;;  %v352_v15 = vmul.f32 %v1550_v5, %v1473_v52  ;;  %1078 = vrsqrt.f32 %v1526_v49  ;;  %999 = vmatmul.msk.f32.vlgmr.msrb.gmra.mxu0 %vm18_vm0, %v298_v14 }
  0xaa   :  { %v343_v9 = vmul.f32 %v1543_v4, %v342_v10  ;;  %1080 = vrsqrt.f32 %v1537_v7  ;;  %v486_v34 = vsel %vm485_vm1, %v1444_v48, %v482_v22  ;;  %vm669_vm2 = vweird.f32 %v1539_v53 }
  0xab   :  { %v1562_v28 = vsel %vm680_vm13, %v1475_v54, %v677_v20  ;;  %v655_v54 = vld [vmem:[%s1856_s1 + $0x88] sm:$0xff]  ;;  %v665_v12 = vmul.f32 0.5, %v664_v29  ;;  %v353_v33 = vmul.f32 %v1550_v5, %v352_v15  ;;  %v490_v39 = vmul.f32 %v486_v34, %v460_v19  ;;  %vm670_vm11 = vmor %vm668_vm14, %vm669_vm2 }
  0xac   :  { %v344_v56 = vmul.f32 0.5, %v343_v9  ;;  %v685_v18 = vmul.f32 %v1562_v28, %v655_v54  ;;  %vm347_vm3 = vweird.f32 %v1463_v55  ;;  %vm348_vm4 = vweird.f32 %v1543_v4 }
  0xad   :  { %v666_v6 = vsub.f32 1.5, %v665_v12  ;;  %v354_v11 = vmul.f32 0.5, %v353_v33  ;;  %vm358_vm5 = vweird.f32 %v1550_v5  ;;  %vm741_vm6 = vweird.f32 %v1524_v2  ;;  %511 = vmatpush.msrb.mxu3 %v490_v39  ;;  %v333_v33 = vld [vmem:[%s1856_s1 + $0x50] sm:$0xff] }
  0xae   :  { %v1589_v35 = vpop.eup %1076  ;;  %v1601_v41 = vpop.xlane.xlu2 %846  ;;  %706 = vmatpush.msra.mxu2 %v685_v18  ;;  %v472_v45 = vmul.f32 %v1465_v50, %v471_v27  ;;  %vm731_vm8 = vweird.f32 %v1526_v49  ;;  %v345_v60 = vsub.f32 1.5, %v344_v56  ;;  %vm804_vm10 = vweird.f32 %v1537_v7  ;;  %vm359_vm1 = vmor %vm357_vm15, %vm358_vm5  ;;  %v718_v18 = vld [vmem:[%s1856_s1 + $0x98] sm:$0xff] }
  0xaf   :  { %v1593_v40 = vpop.xlane.xlu0 %783  ;;  %v736_v17 = vmul.f32 %v1589_v35, %v1524_v2  ;;  %v667_v46 = vmul.f32 %v1539_v53, %v666_v6  ;;  %v355_v47 = vsub.f32 1.5, %v354_v11  ;;  %v1618_v1 = vpop.eup %1078  ;;  %994 = vmatmul.msk.f32.gmra.mxu1 %vm18_vm0, %v1521_v16  ;;  %vm742_vm9 = vweird.f32 %v1589_v35 }
  0xb0   :  { %v1599_v48 = vpop.xlane.xlu1 %849  ;;  %1082 = vrsqrt.f32 %v1593_v40  ;;  %v476_v8 = vsel %vm475_vm7, %v1465_v50, %v472_v45  ;;  %v1625_v13 = vpop.eup %1080  ;;  %v726_v62 = vmul.f32 %v1618_v1, %v1526_v49  ;;  %v1631_v0 = vmul.f32 %v486_v34, %v1195_v24  ;;  %1004 = vmatmul.msk.f32.gmra.mxu2 %vm18_vm0, %v1492_v51  ;;  %v654_v50 = vld [vmem:[%s1856_s1 + $0x80] sm:$0xff]  ;;  %vm743_vm7 = vmor %vm741_vm6, %vm742_vm9 }
  0xb1   :  { %v737_v3 = vmul.f32 %v1589_v35, %v736_v17  ;;  %1084 = vrsqrt.f32 %v1599_v48  ;;  %vm732_vm12 = vweird.f32 %v1618_v1  ;;  %v799_v16 = vmul.f32 %v1625_v13, %v1537_v7  ;;  %1000 = vmatmul.msk.f32.gmra.mxu0 %vm18_vm0, %v299_v21 }
  0xb2   :  { %1086 = vrsqrt.f32 %v1601_v41  ;;  %v489_v20 = vmul.f32 %v476_v8, %v459_v58  ;;  %vm867_vm13 = vweird.f32 %v1599_v48  ;;  %v356_v24 = vmul.f32 %v1550_v5, %v355_v47 }
  0xb3   :  { %v738_v63 = vmul.f32 0.5, %v737_v3  ;;  %v727_v57 = vmul.f32 %v1618_v1, %v726_v62  ;;  %v487_v61 = vmul.f32 %v476_v8, %v1200_v25  ;;  %vm794_vm14 = vweird.f32 %v1593_v40  ;;  %v781_v3 = vld [vmem:[%s1856_s1 + $0xa8] sm:$0xff]  ;;  %v717_v8 = vld [vmem:[%s1856_s1 + $0x90] sm:$0xff] }
  0xb4   :  { %vm857_vm2 = vweird.f32 %v1601_v41  ;;  %v671_v59 = vsel %vm670_vm11, %v1539_v53, %v667_v46  ;;  %v800_v10 = vmul.f32 %v1625_v13, %v799_v16  ;;  %512 = vmatpush.msrb.mxu3 %v489_v20  ;;  %v1661_v52 = vsel %vm359_vm1, %v1550_v5, %v356_v24  ;;  %v334_v53 = vld [vmem:[%s1856_s1 + $0x58] sm:$0xff]  ;;  %vm349_vm1 = vmor %vm347_vm3, %vm348_vm4 }
  0xb5   :  { %v739_v51 = vsub.f32 1.5, %v738_v63  ;;  %v684_v14 = vmul.f32 %v671_v59, %v654_v50  ;;  %v346_v23 = vmul.f32 %v1543_v4, %v345_v60  ;;  %v728_v15 = vmul.f32 0.5, %v727_v57  ;;  %1005 = vmatmul.msk.f32.vlgmr.msrb.gmra.mxu3 %vm18_vm0, %v487_v61  ;;  %vm1709_vm3 = vmor %vm731_vm8, %vm732_vm12  ;;  %v844_v20 = vld [vmem:[%s1856_s1 + $0xb8] sm:$0xff]  ;;  %v843_v61 = vld [vmem:[%s1856_s1 + $0xb0] sm:$0xff] }
  0xb6   :  { %v1657_v22 = vpop.eup %1082  ;;  %v682_v5 = vmul.f32 %v671_v59, %v1216_v30  ;;  %v801_v27 = vmul.f32 0.5, %v800_v10  ;;  %vm805_vm15 = vweird.f32 %v1625_v13  ;;  %v364_v39 = vmul.f32 %v1661_v52, %v334_v53 }
  0xb7   :  { %v1664_v25 = vpop.eup %1084  ;;  %v740_v29 = vmul.f32 %v1589_v35, %v739_v51  ;;  %v789_v19 = vmul.f32 %v1657_v22, %v1593_v40  ;;  %vm795_vm5 = vweird.f32 %v1657_v22  ;;  %707 = vmatpush.msra.mxu2 %v684_v14  ;;  %v729_v21 = vsub.f32 1.5, %v728_v15  ;;  %vm806_vm6 = vmor %vm804_vm10, %vm805_vm15 }
  0xb8   :  { %v1674_v54 = vpop.eup %1086  ;;  %v862_v9 = vmul.f32 %v1664_v25, %v1599_v48  ;;  %vm868_vm11 = vweird.f32 %v1664_v25  ;;  %v802_v34 = vsub.f32 1.5, %v801_v27  ;;  %1023 = vmatmul.msk.f32.vlgmr.msra.gmra.mxu2 %vm18_vm0, %v682_v5  ;;  %v350_v55 = vsel %vm349_vm1, %v1543_v4, %v346_v23  ;;  %385 = vmatpush.msrb.mxu1 %v364_v39  ;;  %vm1731_vm8 = vmor %vm794_vm14, %vm795_vm5 }
  0xb9   :  { %v790_v12 = vmul.f32 %v1657_v22, %v789_v19  ;;  %v852_v30 = vmul.f32 %v1674_v54, %v1601_v41  ;;  %v744_v2 = vsel %vm743_vm7, %v1589_v35, %v740_v29  ;;  %v730_v6 = vmul.f32 %v1618_v1, %v729_v21  ;;  %vm1743_vm10 = vmor %vm867_vm13, %vm868_vm11 }
  0xba   :  { %v863_v56 = vmul.f32 %v1664_v25, %v862_v9  ;;  %v803_v45 = vmul.f32 %v1625_v13, %v802_v34  ;;  %vm858_vm4 = vweird.f32 %v1674_v54  ;;  %v363_v47 = vmul.f32 %v350_v55, %v333_v33 }
  0xbb   :  { %v791_v11 = vmul.f32 0.5, %v790_v12  ;;  %v853_v17 = vmul.f32 %v1674_v54, %v852_v30  ;;  %v361_v58 = vmul.f32 %v350_v55, %v1221_v31  ;;  %v748_v60 = vmul.f32 %v744_v2, %v718_v18  ;;  %vm859_vm9 = vmor %vm857_vm2, %vm858_vm4 }
  0xbc   :  { %v864_v46 = vmul.f32 0.5, %v863_v56  ;;  %v807_v63 = vsel %vm806_vm6, %v1625_v13, %v803_v45  ;;  %386 = vmatpush.msrb.mxu1 %v363_v47  ;;  %v734_v31 = vsel %vm1709_vm3, %v1618_v1, %v730_v6  ;;  %v780_v1 = vld [vmem:[%s1856_s1 + $0xa0] sm:$0xff]  ;;  %v683_v51 = vmul.f32 %v1562_v28, %v1205_v26 }
  0xbd   :  { %v792_v49 = vsub.f32 1.5, %v791_v11  ;;  %v854_v4 = vmul.f32 0.5, %v853_v17  ;;  %1001 = vmatmul.msk.f32.vlgmr.msrb.gmra.mxu1 %vm18_vm0, %v361_v58  ;;  %1006 = vmatmul.msk.f32.gmra.mxu3 %vm18_vm0, %v1631_v0  ;;  %v811_v16 = vmul.f32 %v807_v63, %v781_v3  ;;  %v747_v24 = vmul.f32 %v734_v31, %v717_v8 }
  0xbe   :  { %v865_v7 = vsub.f32 1.5, %v864_v46  ;;  %769 = vmatpush.msra.mxu3 %v748_v60  ;;  %v362_v28 = vmul.f32 %v1661_v52, %v1226_v32  ;;  %v809_v29 = vmul.f32 %v807_v63, %v1247_v38  ;;  %vm521_vm12 = vcmask 64512  }
  0xbf   :  { %v793_v50 = vmul.f32 %v1657_v22, %v792_v49  ;;  %v855_v40 = vsub.f32 1.5, %v854_v4  ;;  %832 = vmatpush.msrb.mxu2 %v811_v16 }
  0xc0   :  { %v866_v48 = vmul.f32 %v1664_v25, %v865_v7  ;;  %770 = vmatpush.msra.mxu3 %v747_v24  ;;  %1024 = vmatmul.msk.f32.gmra.mxu2 %vm18_vm0, %v683_v51 }
  0xc1   :  { %v856_v0 = vmul.f32 %v1674_v54, %v855_v40  ;;  %v797_v57 = vsel %vm1731_vm8, %v1657_v22, %v793_v50  ;;  %v745_v22 = vmul.f32 %v734_v31, %v1242_v37 }
  0xc2   :  { %v870_v41 = vsel %vm1743_vm10, %v1664_v25, %v866_v48  ;;  %v810_v59 = vmul.f32 %v797_v57, %v780_v1  ;;  %v808_v23 = vmul.f32 %v797_v57, %v1258_v42  ;;  %v746_v25 = vmul.f32 %v744_v2, %v1237_v36  ;;  %v267_v42 = vld [vmem:[%s1857_s2] sm:$0xff]  ;;  %v520_v36 = vld [vmem:[%s1857_s2 + $0x8] sm:$0xff] }
  0xc3   :  { %v874_v10 = vmul.f32 %v870_v41, %v844_v20  ;;  %v860_v14 = vsel %vm859_vm9, %v1674_v54, %v856_v0  ;;  %v872_v37 = vmul.f32 %v870_v41, %v1268_v44  ;;  %626 = vmatpush.msra.mxu1 %v267_v42  ;;  %561 = vmatpush.msra.mxu0 %v520_v36  ;;  %v904_v44 = vld [vmem:[%s1857_s2 + $0x10] sm:$0xff] }
  0xc4   :  { %833 = vmatpush.msrb.mxu2 %v810_v59  ;;  %v873_v26 = vmul.f32 %v860_v14, %v843_v61  ;;  %v871_v32 = vmul.f32 %v860_v14, %v1263_v43 }
  0xc5   :  { %895 = vmatpush.msrb.mxu3 %v874_v10  ;;  %1002 = vmatmul.msk.f32.gmra.mxu1 %vm18_vm0, %v362_v28 }
  0xc6   :  { %1025 = vmatmul.msk.f32.vlgmr.msra.gmra.mxu3 %vm18_vm0, %v745_v22  ;;  %944 = vmatpush.msra.mxu2 %v904_v44 }
  0xc7   :  { %896 = vmatpush.msrb.mxu3 %v873_v26 }
  0xc8   :  { %1027 = vmatmul.msk.f32.vlgmr.msrb.gmra.mxu2 %vm18_vm0, %v808_v23 }
  0xc9   :  { %1039 = vmatpush.msra.mxu3 %v904_v44 }
  0xce   :  { %1026 = vmatmul.msk.f32.gmra.mxu3 %vm18_vm0, %v746_v25 }
  0xd0   :  { %1028 = vmatmul.msk.f32.gmra.mxu2 %vm18_vm0, %v809_v29 }
  0xd6   :  { %1029 = vmatmul.msk.f32.vlgmr.msrb.gmra.mxu3 %vm18_vm0, %v871_v32 }
  0xde   :  { %1030 = vmatmul.msk.f32.gmra.mxu3 %vm18_vm0, %v872_v37  ;;  %vm978_vm0 = vcmask 195584  }
 0x113   :  { %v72_v38 = vpop.f32.mrf.mxu0 }
 0x114   :  { %1015 = vmatmul.msk.f32.vlgmr.msra.gmra.mxu1 %vm521_vm12, %v72_v38 }
 0x11a   :  { %v198_v43 = vpop.f32.mrf.mxu2 }
 0x11b   :  { %v75_v52 = vpop.f32.mrf.mxu0 }
 0x11c   :  { %1016 = vmatmul.msk.f32.gmra.mxu1 %vm521_vm12, %v75_v52 }
 0x122   :  { %v201_v15 = vpop.f32.mrf.mxu2  ;;  %v261_v53 = vpop.f32.mrf.mxu3 }
 0x124   :  { %v135_v19 = vpop.f32.mrf.mxu1 }
 0x125   :  { %1017 = vmatmul.msk.f32.gmra.mxu1 %vm521_vm12, %v135_v19 }
 0x126   :  { %v325_v5 = vpop.f32.mrf.mxu0 }
 0x127   :  { %1007 = vmatmul.msk.f32.vlgmr.msra.gmra.mxu0 %vm521_vm12, %v325_v5 }
 0x12a   :  { %v264_v9 = vpop.f32.mrf.mxu3 }
 0x12b   :  { %v451_v54 = vpop.f32.mrf.mxu2 }
 0x12c   :  { %v138_v27 = vpop.f32.mrf.mxu1 }
 0x12d   :  { %1018 = vmatmul.msk.f32.gmra.mxu1 %vm521_vm12, %v138_v27 }
 0x12e   :  { %v328_v21 = vpop.f32.mrf.mxu0 }
 0x12f   :  { %1008 = vmatmul.msk.f32.gmra.mxu0 %vm521_vm12, %v328_v21 }
 0x133   :  { %v454_v12 = vpop.f32.mrf.mxu2 }
 0x135   :  { %1019 = vmatmul.msk.f32.gmra.mxu1 %vm521_vm12, %v198_v43 }
 0x138   :  { %v514_v30 = vpop.f32.mrf.mxu3 }
 0x13a   :  { %v388_v33 = vpop.f32.mrf.mxu1 }
 0x13b   :  { %1009 = vmatmul.msk.f32.gmra.mxu0 %vm521_vm12, %v388_v33  ;;  %v709_v2 = vpop.f32.mrf.mxu2 }
 0x13c   :  { %1031 = vmatmul.msk.f32.vlgmr.msra.gmra.mxu2 %vm521_vm12, %v709_v2 }
 0x13d   :  { %1020 = vmatmul.msk.f32.gmra.mxu1 %vm521_vm12, %v201_v15 }
 0x140   :  { %v517_v34 = vpop.f32.mrf.mxu3 }
 0x142   :  { %v391_v56 = vpop.f32.mrf.mxu1 }
 0x143   :  { %1010 = vmatmul.msk.f32.gmra.mxu0 %vm521_vm12, %v391_v56  ;;  %v712_v39 = vpop.f32.mrf.mxu2 }
 0x144   :  { %1032 = vmatmul.msk.f32.gmra.mxu2 %vm521_vm12, %v712_v39 }
 0x145   :  { %1021 = vmatmul.msk.f32.gmra.mxu1 %vm521_vm12, %v261_v53 }
 0x149   :  { %v772_v18 = vpop.f32.mrf.mxu3 }
 0x14b   :  { %1011 = vmatmul.msk.f32.gmra.mxu0 %vm521_vm12, %v451_v54  ;;  %v835_v6 = vpop.f32.mrf.mxu2 }
 0x14c   :  { %1033 = vmatmul.msk.f32.gmra.mxu2 %vm521_vm12, %v772_v18  ;;  %1035 = vmatmul.msk.f32.vlgmr.msra.gmra.mxu3 %vm521_vm12, %v835_v6 }
 0x14d   :  { %1022 = vmatmul.msk.f32.gmra.mxu1 %vm521_vm12, %v264_v9 }
 0x151   :  { %v775_v11 = vpop.f32.mrf.mxu3 }
 0x153   :  { %1012 = vmatmul.msk.f32.gmra.mxu0 %vm521_vm12, %v454_v12  ;;  %v838_v17 = vpop.f32.mrf.mxu2 }
 0x154   :  { %1034 = vmatmul.msk.f32.gmra.mxu2 %vm521_vm12, %v775_v11  ;;  %1036 = vmatmul.msk.f32.gmra.mxu3 %vm521_vm12, %v838_v17 }
 0x159   :  { %v898_v55 = vpop.f32.mrf.mxu3 }
 0x15b   :  { %1013 = vmatmul.msk.f32.gmra.mxu0 %vm521_vm12, %v514_v30 }
 0x15c   :  { %1037 = vmatmul.msk.f32.gmra.mxu3 %vm521_vm12, %v898_v55 }
 0x161   :  { %v901_v35 = vpop.f32.mrf.mxu3 }
 0x163   :  { %1014 = vmatmul.msk.f32.gmra.mxu0 %vm521_vm12, %v517_v34 }
 0x164   :  { %1038 = vmatmul.msk.f32.gmra.mxu3 %vm521_vm12, %v901_v35 }
 0x191   :  { %v628_v45 = vpop.f32.mrf.mxu1 }
 0x199   :  { %v631_v47 = vpop.f32.mrf.mxu1 }
 0x1a2   :  { %v634_v49 = vpop.f32.mrf.mxu1 }
 0x1a4   :  { %v563_v46 = vpop.f32.mrf.mxu0 }
 0x1a5   :  { %v629_v58 = vadd.f32 %v628_v45, %v563_v46 }
 0x1aa   :  { %v637_v60 = vpop.f32.mrf.mxu1 }
 0x1ac   :  { %v566_v3 = vpop.f32.mrf.mxu0 }
 0x1ad   :  { %v632_v7 = vadd.f32 %v631_v47, %v566_v3 }
 0x1b2   :  { %v640_v13 = vpop.f32.mrf.mxu1 }
 0x1b8   :  { %v569_v4 = vpop.f32.mrf.mxu0 }
 0x1b9   :  { %v635_v16 = vadd.f32 %v634_v49, %v569_v4 }
 0x1ba   :  { %v643_v57 = vpop.f32.mrf.mxu1 }
 0x1bf   :  { %v946_v63 = vpop.f32.mrf.mxu2 }
 0x1c0   :  { %v572_v8 = vpop.f32.mrf.mxu0  ;;  %v970_v62 = vadd.f32 %v946_v63, %v629_v58 }
 0x1c1   :  { %v638_v61 = vadd.f32 %v637_v60, %v572_v8 }
 0x1c2   :  { %979 = vst.msk [vmem:[%s1858_s3] sm:$0xff] %vm978_vm0, %v970_v62  ;;  %v646_v22 = vpop.f32.mrf.mxu1 }
 0x1c7   :  { %v949_v50 = vpop.f32.mrf.mxu2 }
 0x1c8   :  { %v575_v31 = vpop.f32.mrf.mxu0  ;;  %v971_v40 = vadd.f32 %v949_v50, %v632_v7 }
 0x1c9   :  { %v641_v1 = vadd.f32 %v640_v13, %v575_v31 }
 0x1ca   :  { %980 = vst.msk [vmem:[%s1858_s3 + $0x8] sm:$0xff] %vm978_vm0, %v971_v40  ;;  %v649_v37 = vpop.f32.mrf.mxu1 }
 0x1cf   :  { %v952_v20 = vpop.f32.mrf.mxu2  ;;  %v958_v0 = vpop.f32.mrf.mxu3 }
 0x1d0   :  { %v578_v48 = vpop.f32.mrf.mxu0  ;;  %v972_v24 = vadd.f32 %v952_v20, %v635_v16  ;;  %v974_v51 = vadd.f32 %v958_v0, %v641_v1 }
 0x1d1   :  { %v644_v41 = vadd.f32 %v643_v57, %v578_v48 }
 0x1d2   :  { %981 = vst.msk [vmem:[%s1858_s3 + $0x10] sm:$0xff] %vm978_vm0, %v972_v24 }
 0x1d3   :  { %983 = vst.msk [vmem:[%s1858_s3 + $0x20] sm:$0xff] %vm978_vm0, %v974_v51 }
 0x1d7   :  { %v955_v59 = vpop.f32.mrf.mxu2  ;;  %v961_v14 = vpop.f32.mrf.mxu3 }
 0x1d8   :  { %v973_v10 = vadd.f32 %v955_v59, %v638_v61  ;;  %v975_v26 = vadd.f32 %v961_v14, %v644_v41  ;;  %v581_v28 = vpop.f32.mrf.mxu0 }
 0x1d9   :  { %v647_v23 = vadd.f32 %v646_v22, %v581_v28 }
 0x1da   :  { %982 = vst.msk [vmem:[%s1858_s3 + $0x18] sm:$0xff] %vm978_vm0, %v973_v10 }
 0x1db   :  { %984 = vst.msk [vmem:[%s1858_s3 + $0x28] sm:$0xff] %vm978_vm0, %v975_v26 }
 0x1df   :  { %v964_v25 = vpop.f32.mrf.mxu3 }
 0x1e0   :  { %v976_v29 = vadd.f32 %v964_v25, %v647_v23  ;;  %v584_v32 = vpop.f32.mrf.mxu0 }
 0x1e1   :  { %v650_v42 = vadd.f32 %v649_v37, %v584_v32 }
 0x1e2   :  { %985 = vst.msk [vmem:[%s1858_s3 + $0x30] sm:$0xff] %vm978_vm0, %v976_v29 }
 0x1e7   :  { %v967_v36 = vpop.f32.mrf.mxu3 }
 0x1e8   :  { %v977_v38 = vadd.f32 %v967_v36, %v650_v42 }
 0x1ea   :  { %986 = vst.msk [vmem:[%s1858_s3 + $0x38] sm:$0xff] %vm978_vm0, %v977_v38 }

</bundles_post_ra>
